<compile_context>
chip_gen: v5e
topology: v5e:2x2
jax: 0.10.0
libtpu: 0.0.40
codegen_flags: <defaults>
</compile_context>

<pallas_src>
import jax
import jax.numpy as jnp
from jax import lax
from jax.experimental import pallas as pl
from jax.experimental.pallas import tpu as pltpu

EPS = 1e-5
LANE = 128
SUBLANE = 8


def _round_up(n, m):
    return ((n + m - 1) // m) * m


# -----------------------------------------------------------------------------
# One-time parameter packing (hoisted out of the per-call path).
# -----------------------------------------------------------------------------
def prepare_params(params):
    """Pack weights / BN vectors into two lane-dense slabs.

    Returns (packed, meta):
      packed["wslab"]: (d_in_p + h1p + h2p, wcol) f32  -- w1 / w2 / w3 stacked,
                        each zero-padded to a multiple-of-128 output width.
      packed["vslab"]: (8, wcol) f32 -- rows = g1, be1, g2, be2, b3, 0, 0, 0.
    b1 / b2 are intentionally ignored: training-mode BN cancels them exactly.
    """
    w1, w2, w3 = params["w1"], params["w2"], params["w3"]
    g1, be1 = params["g1"], params["be1"]
    g2, be2 = params["g2"], params["be2"]
    b3 = params["b3"]

    d_in, h1 = w1.shape
    _, h2 = w2.shape
    _, n_out = w3.shape

    d_in_p = _round_up(d_in, SUBLANE)
    h1p = _round_up(h1, LANE)
    h2p = _round_up(h2, LANE)
    n_p = _round_up(n_out, LANE)
    wcol = max(h1p, h2p, n_p)

    def pad2(a, rows, cols):
        return jnp.pad(a, ((0, rows - a.shape[0]), (0, cols - a.shape[1])))

    wslab = jnp.concatenate(
        [pad2(w1, d_in_p, wcol), pad2(w2, h1p, wcol), pad2(w3, h2p, wcol)],
        axis=0)

    vec_rows = [pad2(g1, 1, wcol), pad2(be1, 1, wcol),
                pad2(g2, 1, wcol), pad2(be2, 1, wcol),
                pad2(b3, 1, wcol)]
    vslab = jnp.concatenate(
        vec_rows + [jnp.zeros((SUBLANE - len(vec_rows), wcol), jnp.float32)],
        axis=0)

    meta = dict(d_in=d_in, h1=h1, h2=h2, n_out=n_out,
                d_in_p=d_in_p, h1p=h1p, h2p=h2p, n_p=n_p, wcol=wcol)
    return {"wslab": wslab, "vslab": vslab}, meta


# -----------------------------------------------------------------------------
# Kernel
# -----------------------------------------------------------------------------
def _make_kernel(d_in_p, h1p, h2p, n_p, b_real, b_pad):
    r1 = d_in_p          # end of w1 rows
    r2 = r1 + h1p        # end of w2 rows
    r3 = r2 + h2p        # end of w3 rows
    inv_b = 1.0 / float(b_real)
    need_mask = b_pad != b_real
    # Explicit precision (DEFAULT multi-pass bf16).  Use Precision.HIGHEST if
    # bit-exact f32 matmuls are required.
    prec = lax.Precision.DEFAULT

    def kernel(x_ref, w_ref, vec_ref, out_ref):
        x = x_ref[...]                                   # (b_pad, d_in_p)

        # Static, tile-aligned slices of the packed slabs.
        w1 = w_ref[0:r1, 0:h1p]
        w2 = w_ref[r1:r2, 0:h2p]
        w3 = w_ref[r2:r3, 0:n_p]
        g1 = vec_ref[0:1, 0:h1p]
        be1 = vec_ref[1:2, 0:h1p]
        g2 = vec_ref[2:3, 0:h2p]
        be2 = vec_ref[3:4, 0:h2p]
        b3 = vec_ref[4:5, 0:n_p]

        if need_mask:
            row = lax.broadcasted_iota(jnp.int32, (b_pad, 1), 0)
            row_mask = (row < b_real).astype(jnp.float32)

        # ---- hidden1: Linear (bias cancelled by BN) + BN(batch) + ReLU ----
        h = jnp.dot(x, w1, preferred_element_type=jnp.float32, precision=prec)
        m = jnp.sum(h, axis=0, keepdims=True) * inv_b    # padded rows are 0
        c = h - m
        if need_mask:
            c = c * row_mask                             # exclude pad rows from var
        v = jnp.sum(c * c, axis=0, keepdims=True) * inv_b
        scale = lax.rsqrt(v + EPS) * g1                  # padded cols: g1 == 0
        h = jnp.maximum(c * scale + be1, 0.0)
        if need_mask:
            h = h * row_mask                             # keep pad rows out of layer-2 stats

        # ---- hidden2: Linear (bias cancelled by BN) + BN(batch) + ReLU ----
        h = jnp.dot(h, w2, preferred_element_type=jnp.float32, precision=prec)
        m = jnp.sum(h, axis=0, keepdims=True) * inv_b
        c = h - m
        if need_mask:
            c = c * row_mask
        v = jnp.sum(c * c, axis=0, keepdims=True) * inv_b
        scale = lax.rsqrt(v + EPS) * g2
        h = jnp.maximum(c * scale + be2, 0.0)

        # ---- output layer: Linear, lane-dense (padded) store ----
        out_ref[...] = jnp.dot(h, w3, preferred_element_type=jnp.float32,
                               precision=prec) + b3

    return kernel


# -----------------------------------------------------------------------------
# Wrapper
# -----------------------------------------------------------------------------
def net_forward(x, packed, meta):
    """Forward pass. x: (B, input_size) f32; packed/meta from prepare_params."""
    B, d_in = x.shape
    assert d_in == meta["d_in"], "feature width mismatch"

    d_in_p, h1p, h2p, n_p = meta["d_in_p"], meta["h1p"], meta["h2p"], meta["n_p"]
    b_pad = _round_up(max(B, SUBLANE), SUBLANE)

    if b_pad != B or d_in_p != d_in:
        x = jnp.pad(x, ((0, b_pad - B), (0, d_in_p - d_in)))

    kernel = _make_kernel(d_in_p, h1p, h2p, n_p, b_real=B, b_pad=b_pad)

    wslab, vslab = packed["wslab"], packed["vslab"]
    flops = 2 * b_pad * (d_in_p * h1p + h1p * h2p + h2p * n_p) \
        + 12 * b_pad * (h1p + h2p)
    bytes_accessed = 4 * (b_pad * d_in_p + wslab.size + vslab.size + b_pad * n_p)
    cost = pl.CostEstimate(flops=int(flops),
                           transcendentals=int(h1p + h2p),
                           bytes_accessed=int(bytes_accessed))

    # Whole-array VMEM residency; nothing to pipeline at grid=(), so no
    # double-buffering bookkeeping.
    vspec = pl.BlockSpec(memory_space=pltpu.MemorySpace.VMEM)

    out_full = pl.pallas_call(
        kernel,
        out_shape=jax.ShapeDtypeStruct((b_pad, n_p), jnp.float32),
        in_specs=[vspec, vspec, vspec],
        out_specs=vspec,
        compiler_params=pltpu.CompilerParams(vmem_limit_bytes=2 * 1024 * 1024),
        cost_estimate=cost,
    )(x, wslab, vslab)

    return out_full[:B, :meta["n_out"]]


# -----------------------------------------------------------------------------
# Reference + synthetic params
# -----------------------------------------------------------------------------
def init_params(key, input_size, hidden1, hidden2, output_size):
    """Deterministic synthetic parameters (PyTorch-like uniform init)."""
    ks = jax.random.split(key, 6)

    def lin(kw, kb, fan_in, fan_out):
        bound = 1.0 / jnp.sqrt(fan_in)
        w = jax.random.uniform(kw, (fan_in, fan_out), jnp.float32, -bound, bound)
        b = jax.random.uniform(kb, (1, fan_out), jnp.float32, -bound, bound)
        return w, b

    w1, b1 = lin(ks[0], ks[1], input_size, hidden1)
    w2, b2 = lin(ks[2], ks[3], hidden1, hidden2)
    w3, b3 = lin(ks[4], ks[5], hidden2, output_size)

    return {
        "w1": w1, "b1": b1,
        "g1": jnp.ones((1, hidden1), jnp.float32),
        "be1": jnp.zeros((1, hidden1), jnp.float32),
        "w2": w2, "b2": b2,
        "g2": jnp.ones((1, hidden2), jnp.float32),
        "be2": jnp.zeros((1, hidden2), jnp.float32),
        "w3": w3, "b3": b3,
    }


def net_forward_ref(x, p):
    """Pure-JAX reference matching the PyTorch module exactly (biases kept)."""
    h1 = x @ p["w1"] + p["b1"]
    m1 = h1.mean(0, keepdims=True)
    v1 = ((h1 - m1) ** 2).mean(0, keepdims=True)
    h1 = jnp.maximum((h1 - m1) / jnp.sqrt(v1 + EPS) * p["g1"] + p["be1"], 0.0)
    h2 = h1 @ p["w2"] + p["b2"]
    m2 = h2.mean(0, keepdims=True)
    v2 = ((h2 - m2) ** 2).mean(0, keepdims=True)
    h2 = jnp.maximum((h2 - m2) / jnp.sqrt(v2 + EPS) * p["g2"] + p["be2"], 0.0)
    return h2 @ p["w3"] + p["b3"]


if __name__ == "__main__":
    batch, input_size, hidden1, hidden2, output_size = 8, 16, 32, 32, 4

    key = jax.random.PRNGKey(0)
    kx, kp = jax.random.split(key)
    x = jax.random.normal(kx, (batch, input_size), jnp.float32)
    params = init_params(kp, input_size, hidden1, hidden2, output_size)

    packed, meta = prepare_params(params)       # one-time packing

    out = net_forward(x, packed, meta)
    jax.block_until_ready(out)
    ref = net_forward_ref(x, params)
    assert out.shape == (batch, output_size)
    assert jnp.allclose(out, ref, atol=1e-4, rtol=1e-4), "mismatch vs reference"

    # Ragged-batch path: B=6 is padded to 8 in the wrapper and the padded rows
    # are masked out of the BN statistics inside the kernel.
    out6 = net_forward(x[:6], packed, meta)
    jax.block_until_ready(out6)
    ref6 = net_forward_ref(x[:6], params)
    assert out6.shape == (6, output_size)
    assert jnp.allclose(out6, ref6, atol=1e-4, rtol=1e-4), "ragged-batch mismatch"

    print("KERNEL_OK")
</pallas_src>

<mosaic_0001>
module attributes {stable_mosaic.version = 11 : i64} {
  func.func @kernel(%arg0: memref<8x16xf32, #tpu.memory_space<vmem>>, %arg1: memref<272x128xf32, #tpu.memory_space<vmem>>, %arg2: memref<8x128xf32, #tpu.memory_space<vmem>>, %arg3: memref<8x128xf32, #tpu.memory_space<vmem>>) attributes {dimension_semantics = [], scalar_prefetch = 0 : i64, scratch_operands = 0 : i64, tpu.core_type = #tpu.core_type<tc>} {
    %c0 = arith.constant 0 : index
    %c0_0 = arith.constant 0 : index
    %0 = vector.load %arg0[%c0, %c0_0] : memref<8x16xf32, #tpu.memory_space<vmem>>, vector<8x16xf32>
    %c0_1 = arith.constant 0 : index
    %c0_2 = arith.constant 0 : index
    %1 = vector.load %arg1[%c0_1, %c0_2] : memref<272x128xf32, #tpu.memory_space<vmem>>, vector<16x128xf32>
    %c16 = arith.constant 16 : index
    %c0_3 = arith.constant 0 : index
    %2 = vector.load %arg1[%c16, %c0_3] : memref<272x128xf32, #tpu.memory_space<vmem>>, vector<128x128xf32>
    %c144 = arith.constant 144 : index
    %c0_4 = arith.constant 0 : index
    %3 = vector.load %arg1[%c144, %c0_4] : memref<272x128xf32, #tpu.memory_space<vmem>>, vector<128x128xf32>
    %c0_5 = arith.constant 0 : index
    %c0_6 = arith.constant 0 : index
    %4 = vector.load %arg2[%c0_5, %c0_6] : memref<8x128xf32, #tpu.memory_space<vmem>>, vector<1x128xf32>
    %c1 = arith.constant 1 : index
    %c0_7 = arith.constant 0 : index
    %5 = vector.load %arg2[%c1, %c0_7] : memref<8x128xf32, #tpu.memory_space<vmem>>, vector<1x128xf32>
    %c2 = arith.constant 2 : index
    %c0_8 = arith.constant 0 : index
    %6 = vector.load %arg2[%c2, %c0_8] : memref<8x128xf32, #tpu.memory_space<vmem>>, vector<1x128xf32>
    %c3 = arith.constant 3 : index
    %c0_9 = arith.constant 0 : index
    %7 = vector.load %arg2[%c3, %c0_9] : memref<8x128xf32, #tpu.memory_space<vmem>>, vector<1x128xf32>
    %c4 = arith.constant 4 : index
    %c0_10 = arith.constant 0 : index
    %8 = vector.load %arg2[%c4, %c0_10] : memref<8x128xf32, #tpu.memory_space<vmem>>, vector<1x128xf32>
    %cst = arith.constant dense<0.000000e+00> : vector<8x128xf32>
    %9 = tpu.matmul %0, %1, %cst {dimension_numbers = #tpu.dot_dimension_numbers<[1], [0], [0], [1], [0, 0, 1, 1], [], []>} : vector<8x16xf32>, vector<16x128xf32>, vector<8x128xf32> -> vector<8x128xf32>
    %cst_11 = arith.constant dense<0.000000e+00> : vector<128xf32>
    %10 = vector.multi_reduction <add>, %9, %cst_11 [0] : vector<8x128xf32> to vector<128xf32>
    %11 = vector.shape_cast %10 : vector<128xf32> to vector<1x128xf32>
    %cst_12 = arith.constant 1.250000e-01 : f32
    %12 = vector.broadcast %cst_12 : f32 to vector<1x128xf32>
    %13 = arith.mulf %11, %12 : vector<1x128xf32>
    %14 = vector.broadcast %13 : vector<1x128xf32> to vector<8x128xf32>
    %15 = arith.subf %9, %14 : vector<8x128xf32>
    %16 = arith.mulf %15, %15 : vector<8x128xf32>
    %cst_13 = arith.constant dense<0.000000e+00> : vector<128xf32>
    %17 = vector.multi_reduction <add>, %16, %cst_13 [0] : vector<8x128xf32> to vector<128xf32>
    %18 = vector.shape_cast %17 : vector<128xf32> to vector<1x128xf32>
    %cst_14 = arith.constant 1.250000e-01 : f32
    %19 = vector.broadcast %cst_14 : f32 to vector<1x128xf32>
    %20 = arith.mulf %18, %19 : vector<1x128xf32>
    %cst_15 = arith.constant 9.99999974E-6 : f32
    %21 = vector.broadcast %cst_15 : f32 to vector<1x128xf32>
    %22 = arith.addf %20, %21 : vector<1x128xf32>
    %23 = math.rsqrt %22 : vector<1x128xf32>
    %24 = arith.mulf %23, %4 : vector<1x128xf32>
    %25 = vector.broadcast %24 : vector<1x128xf32> to vector<8x128xf32>
    %26 = arith.mulf %15, %25 : vector<8x128xf32>
    %27 = vector.broadcast %5 : vector<1x128xf32> to vector<8x128xf32>
    %28 = arith.addf %26, %27 : vector<8x128xf32>
    %cst_16 = arith.constant 0.000000e+00 : f32
    %29 = vector.broadcast %cst_16 : f32 to vector<8x128xf32>
    %30 = arith.maximumf %28, %29 : vector<8x128xf32>
    %cst_17 = arith.constant dense<0.000000e+00> : vector<8x128xf32>
    %31 = tpu.matmul %30, %2, %cst_17 {dimension_numbers = #tpu.dot_dimension_numbers<[1], [0], [0], [1], [0, 0, 1, 1], [], []>} : vector<8x128xf32>, vector<128x128xf32>, vector<8x128xf32> -> vector<8x128xf32>
    %cst_18 = arith.constant dense<0.000000e+00> : vector<128xf32>
    %32 = vector.multi_reduction <add>, %31, %cst_18 [0] : vector<8x128xf32> to vector<128xf32>
    %33 = vector.shape_cast %32 : vector<128xf32> to vector<1x128xf32>
    %cst_19 = arith.constant 1.250000e-01 : f32
    %34 = vector.broadcast %cst_19 : f32 to vector<1x128xf32>
    %35 = arith.mulf %33, %34 : vector<1x128xf32>
    %36 = vector.broadcast %35 : vector<1x128xf32> to vector<8x128xf32>
    %37 = arith.subf %31, %36 : vector<8x128xf32>
    %38 = arith.mulf %37, %37 : vector<8x128xf32>
    %cst_20 = arith.constant dense<0.000000e+00> : vector<128xf32>
    %39 = vector.multi_reduction <add>, %38, %cst_20 [0] : vector<8x128xf32> to vector<128xf32>
    %40 = vector.shape_cast %39 : vector<128xf32> to vector<1x128xf32>
    %cst_21 = arith.constant 1.250000e-01 : f32
    %41 = vector.broadcast %cst_21 : f32 to vector<1x128xf32>
    %42 = arith.mulf %40, %41 : vector<1x128xf32>
    %cst_22 = arith.constant 9.99999974E-6 : f32
    %43 = vector.broadcast %cst_22 : f32 to vector<1x128xf32>
    %44 = arith.addf %42, %43 : vector<1x128xf32>
    %45 = math.rsqrt %44 : vector<1x128xf32>
    %46 = arith.mulf %45, %6 : vector<1x128xf32>
    %47 = vector.broadcast %46 : vector<1x128xf32> to vector<8x128xf32>
    %48 = arith.mulf %37, %47 : vector<8x128xf32>
    %49 = vector.broadcast %7 : vector<1x128xf32> to vector<8x128xf32>
    %50 = arith.addf %48, %49 : vector<8x128xf32>
    %cst_23 = arith.constant 0.000000e+00 : f32
    %51 = vector.broadcast %cst_23 : f32 to vector<8x128xf32>
    %52 = arith.maximumf %50, %51 : vector<8x128xf32>
    %cst_24 = arith.constant dense<0.000000e+00> : vector<8x128xf32>
    %53 = tpu.matmul %52, %3, %cst_24 {dimension_numbers = #tpu.dot_dimension_numbers<[1], [0], [0], [1], [0, 0, 1, 1], [], []>} : vector<8x128xf32>, vector<128x128xf32>, vector<8x128xf32> -> vector<8x128xf32>
    %54 = vector.broadcast %8 : vector<1x128xf32> to vector<8x128xf32>
    %55 = arith.addf %53, %54 : vector<8x128xf32>
    %c0_25 = arith.constant 0 : index
    %c0_26 = arith.constant 0 : index
    %56 = vector.load %arg3[%c0_25, %c0_26] : memref<8x128xf32, #tpu.memory_space<vmem>>, vector<8x128xf32>
    tpu.vector_store %arg3[%c0_25, %c0_26], %55 {strides = array<i32>} : memref<8x128xf32, #tpu.memory_space<vmem>>, vector<8x128xf32>,
    return
  }
}

</mosaic_0001>

<bundles_post_ra>
// kernel: tpu_custom_call.1
= control target key start
LH: loop header
LB: loop body
LE: loop exit
PB: predicated region body
PF: predicated region fallthrough
CT: control target
= control target key end

     0   :  { %8 = vsyncpa [#allocation3], 0  ;;  %s402_s0 = inlined_call_operand.hbm [shape: f32[8,16], index: 0, kind: input, shape index: {}]   ;;  %s403_s1 = inlined_call_operand.hbm [shape: f32[272,128], index: 1, kind: input, shape index: {}]   ;;  %s404_s2 = inlined_call_operand.hbm [shape: f32[8,128], index: 2, kind: input, shape index: {}]   ;;  %s405_s3 = inlined_call_operand.hbm [shape: f32[8,128], index: 3, kind: output, shape index: {}]  }
   0x1   :  { %9 = vsyncpa [#allocation6], 0  ;;  %s26_s14 = sshll.u32 %s403_s1, 4  ;;  %s27_s14 = int_to_ptr.hbm [resolvable:$true] %s26_s14 }
   0x2   :  { %10 = vsyncpa [#allocation4], 0  ;;  %s364_s15 = smov [#allocation5]   ;;  %s16_s19 = sshll.u32 %s402_s0, 4  ;;  %s17_s19 = int_to_ptr.hbm [resolvable:$true] %s16_s19 }
   0x3   :  { %s28_s16 = sshll.u32 %s364_s15, 4  ;;  %s365_s20 = smov 128   ;;  %s29_s16 = int_to_ptr.vmem [resolvable:$true] %s28_s16 }
   0x4   :  { %s366_s21 = smov 8   ;;  %s367_s22 = smov [#allocation2]  }
   0x5   :  { %34 = dma.hbm_to_vmem [thread:$0]  %s27_s14, 4352, %s29_s16, [#allocation6], %s365_s20, %s365_s20, %s366_s21  }
   0x6   :  { %s18_s23 = sshll.u32 %s367_s22, 4  ;;  %s40_s26 = sshll.u32 %s404_s2, 4  ;;  %s19_s23 = int_to_ptr.vmem [resolvable:$true] %s18_s23  ;;  %s41_s26 = int_to_ptr.hbm [resolvable:$true] %s40_s26 }
   0x7   :  { %21 = dma.hbm_to_vmem [thread:$0]  %s17_s19, 128, %s19_s23, [#allocation3]  }
   0x8   :  { %s368_s1 = smov [#allocation7]  }
   0x9   :  { %s42_s27 = sshll.u32 %s368_s1, 4  ;;  %s43_s27 = int_to_ptr.vmem [resolvable:$true] %s42_s27 }
   0xa   :  { %45 = dma.hbm_to_vmem [thread:$0]  %s41_s26, 128, %s43_s27, [#allocation6]  }
   0xb   :  { %358 = dma.done.wait [#allocation3], 128  }
   0xc   :  { %359 = vsyncadd [#allocation3], 4294967168 }
   0xd   :  { %360 = dma.done.wait [#allocation6], 4480  }
   0xe   :  { %361 = vsyncadd [#allocation6], 4294962816  ;;  %v60_v0 = vld [vmem:[#allocation5 + $0x8] sm:$0xff]  ;;  %v59_v1 = vld [vmem:[#allocation5] sm:$0xff]  ;;  %vm98_vm0 = vcmask 130048   ;;  %s369_s0 = smov [#allocation8]  }
   0xf   :  { %116 = vmatpush.msra.mxu0 %v60_v0  ;;  %v58_v2 = vld [vmem:[#allocation2] sm:$0xff]  ;;  %v76_v3 = vld [vmem:[#allocation5 + $0x88] sm:$0xff]  ;;  %v75_v6 = vld [vmem:[#allocation5 + $0x80] sm:$0xff]  ;;  %s235_s2 = sshll.u32 %s369_s0, 4  ;;  %s237_s30 = sshll.u32 %s405_s3, 4  ;;  %s236_s2 = int_to_ptr.vmem [resolvable:$true] %s235_s2  ;;  %s238_s30 = int_to_ptr.hbm [resolvable:$true] %s237_s30 }
  0x10   :  { %155 = vmatpush.msra.mxu1 %v76_v3  ;;  %v74_v8 = vld [vmem:[#allocation5 + $0x78] sm:$0xff]  ;;  %v73_v10 = vld [vmem:[#allocation5 + $0x70] sm:$0xff]  ;;  %v72_v12 = vld [vmem:[#allocation5 + $0x68] sm:$0xff] }
  0x11   :  { %117 = vmatpush.msra.mxu0 %v59_v1  ;;  %v71_v14 = vld [vmem:[#allocation5 + $0x60] sm:$0xff]  ;;  %v70_v16 = vld [vmem:[#allocation5 + $0x58] sm:$0xff]  ;;  %v69_v18 = vld [vmem:[#allocation5 + $0x50] sm:$0xff] }
  0x12   :  { %248 = vmatmul.msk.f32.vlgmr.msra.gmra.mxu0 %vm98_vm0, %v58_v2  ;;  %156 = vmatpush.msra.mxu1 %v75_v6  ;;  %v68_v20 = vld [vmem:[#allocation5 + $0x48] sm:$0xff]  ;;  %v67_v22 = vld [vmem:[#allocation5 + $0x40] sm:$0xff]  ;;  %v66_v24 = vld [vmem:[#allocation5 + $0x38] sm:$0xff] }
  0x13   :  { %v65_v26 = vld [vmem:[#allocation5 + $0x30] sm:$0xff]  ;;  %v64_v28 = vld [vmem:[#allocation5 + $0x28] sm:$0xff]  ;;  %v63_v30 = vld [vmem:[#allocation5 + $0x20] sm:$0xff] }
  0x14   :  { %157 = vmatpush.msra.mxu1 %v74_v8  ;;  %v62_v31 = vld [vmem:[#allocation5 + $0x18] sm:$0xff]  ;;  %v61_v33 = vld [vmem:[#allocation5 + $0x10] sm:$0xff]  ;;  %v92_v51 = vld [vmem:[#allocation5 + $0x108] sm:$0xff] }
  0x15   :  { %v93_v42 = vld [vmem:[#allocation7] sm:$0x1]  ;;  %v255_v47 = vld [vmem:[#allocation7 + $0x1] ss:$0 sm:$0xff]  ;;  %209 = vmatpush.msra.mxu2 %v92_v51  ;;  %v91_v54 = vld [vmem:[#allocation5 + $0x100] sm:$0xff] }
  0x16   :  { %158 = vmatpush.msra.mxu1 %v73_v10  ;;  %v90_v56 = vld [vmem:[#allocation5 + $0xf8] sm:$0xff]  ;;  %v89_v58 = vld [vmem:[#allocation5 + $0xf0] sm:$0xff]  ;;  %v88_v60 = vld [vmem:[#allocation5 + $0xe8] sm:$0xff] }
  0x17   :  { %210 = vmatpush.msra.mxu2 %v91_v54  ;;  %v87_v62 = vld [vmem:[#allocation5 + $0xe0] sm:$0xff]  ;;  %v86_v0 = vld [vmem:[#allocation5 + $0xd8] sm:$0xff]  ;;  %v85_v2 = vld [vmem:[#allocation5 + $0xd0] sm:$0xff] }
  0x18   :  { %159 = vmatpush.msra.mxu1 %v72_v12  ;;  %v83_v6 = vld [vmem:[#allocation5 + $0xc0] sm:$0xff]  ;;  %v82_v8 = vld [vmem:[#allocation5 + $0xb8] sm:$0xff]  ;;  %v81_v10 = vld [vmem:[#allocation5 + $0xb0] sm:$0xff] }
  0x19   :  { %211 = vmatpush.msra.mxu2 %v90_v56  ;;  %v80_v12 = vld [vmem:[#allocation5 + $0xa8] sm:$0xff] }
  0x1a   :  { %160 = vmatpush.msra.mxu1 %v71_v14  ;;  %v79_v14 = vld [vmem:[#allocation5 + $0xa0] sm:$0xff] }
  0x1b   :  { %212 = vmatpush.msra.mxu2 %v89_v58 }
  0x1c   :  { %161 = vmatpush.msra.mxu1 %v70_v16 }
  0x1d   :  { %213 = vmatpush.msra.mxu2 %v88_v60 }
  0x1e   :  { %162 = vmatpush.msra.mxu1 %v69_v18 }
  0x1f   :  { %214 = vmatpush.msra.mxu2 %v87_v62 }
  0x20   :  { %163 = vmatpush.msra.mxu1 %v68_v20 }
  0x21   :  { %215 = vmatpush.msra.mxu2 %v86_v0 }
  0x22   :  { %164 = vmatpush.msra.mxu1 %v67_v22 }
  0x23   :  { %216 = vmatpush.msra.mxu2 %v85_v2 }
  0x24   :  { %165 = vmatpush.msra.mxu1 %v66_v24 }
  0x26   :  { %166 = vmatpush.msra.mxu1 %v65_v26  ;;  %v95_v26 = vld [vmem:[#allocation7 + $0x2] sm:$0x1] }
  0x28   :  { %167 = vmatpush.msra.mxu1 %v64_v28 }
  0x2a   :  { %168 = vmatpush.msra.mxu1 %v63_v30 }
  0x2c   :  { %169 = vmatpush.msra.mxu1 %v62_v31  ;;  %v256_v31 = vld [vmem:[#allocation7 + $0x3] ss:$0 sm:$0xff] }
  0x2e   :  { %170 = vmatpush.msra.mxu1 %v61_v33 }
  0x8f   :  { %v119_v4 = vpop.f32.mrf.mxu0 }
  0x90   :  { %v122_v5 = vrot.slane %v119_v4, 4 }
  0x92   :  { %v123_v7 = vadd.f32 %v122_v5, %v119_v4 }
  0x94   :  { %v124_v9 = vrot.slane %v123_v7, 2 }
  0x96   :  { %v125_v11 = vadd.f32 %v124_v9, %v123_v7 }
  0x98   :  { %v126_v13 = vrot.slane %v125_v11, 1 }
  0x9a   :  { %v127_v15 = vadd.f32 %v126_v13, %v125_v11 }
  0x9c   :  { %v128_v17 = vmul.f32 0.125, %v127_v15  ;;  %v78_v15 = vld [vmem:[#allocation5 + $0x98] sm:$0xff] }
  0x9e   :  { %v129_v19 = vsub.f32 %v119_v4, %v128_v17  ;;  %v84_v4 = vld [vmem:[#allocation5 + $0xc8] sm:$0xff]  ;;  %v77_v17 = vld [vmem:[#allocation5 + $0x90] sm:$0xff] }
  0x9f   :  { %217 = vmatpush.msra.mxu2 %v84_v4 }
  0xa0   :  { %v130_v21 = vmul.f32 %v129_v19, %v129_v19 }
  0xa1   :  { %218 = vmatpush.msra.mxu2 %v83_v6 }
  0xa2   :  { %v131_v23 = vrot.slane %v130_v21, 4 }
  0xa3   :  { %219 = vmatpush.msra.mxu2 %v82_v8 }
  0xa4   :  { %v132_v25 = vadd.f32 %v131_v23, %v130_v21 }
  0xa5   :  { %220 = vmatpush.msra.mxu2 %v81_v10 }
  0xa6   :  { %v133_v27 = vrot.slane %v132_v25, 2 }
  0xa7   :  { %221 = vmatpush.msra.mxu2 %v80_v12 }
  0xa8   :  { %v134_v29 = vadd.f32 %v133_v27, %v132_v25 }
  0xa9   :  { %222 = vmatpush.msra.mxu2 %v79_v14 }
  0xaa   :  { %v135_v32 = vrot.slane %v134_v29, 1 }
  0xab   :  { %223 = vmatpush.msra.mxu2 %v78_v15 }
  0xac   :  { %v136_v34 = vadd.f32 %v135_v32, %v134_v29 }
  0xad   :  { %224 = vmatpush.msra.mxu2 %v77_v17 }
  0xae   :  { %v137_v35 = vmul.f32 0.125, %v136_v34 }
  0xb0   :  { %v138_v36 = vadd.f32 1e-05, %v137_v35  ;;  %v257_v35 = vld [vmem:[#allocation7 + $0x4] ss:$0 sm:$0xff] }
  0xb2   :  { %258 = vrsqrt.f32 %v138_v36  ;;  %vm145_vm2 = vweird.f32 %v138_v36 }
  0xb8   :  { %v259_v37 = vpop.eup %258 }
  0xb9   :  { %v140_v38 = vmul.f32 %v259_v37, %v138_v36  ;;  %vm146_vm1 = vweird.f32 %v259_v37 }
  0xba   :  { %vm147_vm3 = vmor %vm145_vm2, %vm146_vm1 }
  0xbb   :  { %v141_v39 = vmul.f32 %v259_v37, %v140_v38 }
  0xbd   :  { %v142_v40 = vmul.f32 0.5, %v141_v39 }
  0xbf   :  { %v143_v41 = vsub.f32 1.5, %v142_v40 }
  0xc1   :  { %v144_v43 = vmul.f32 %v259_v37, %v143_v41 }
  0xc3   :  { %v148_v44 = vsel %vm147_vm3, %v259_v37, %v144_v43 }
  0xc4   :  { %v149_v45 = vmul.f32 %v148_v44, %v93_v42 }
  0xc6   :  { %v150_v46 = vperm.slane %v149_v45, 0 }
  0xc8   :  { %v151_v48 = vmul.f32 %v150_v46, %v129_v19 }
  0xca   :  { %v153_v49 = vadd.f32 %v255_v47, %v151_v48 }
  0xcc   :  { %v154_v50 = vmax.f32 %v153_v49, 0.0 }
  0xce   :  { %171 = vmatmul.f32.vlgmr.msra.gmra.mxu1 %v154_v50 }
 0x14b   :  { %v172_v52 = vpop.f32.mrf.mxu1 }
 0x14c   :  { %v175_v53 = vrot.slane %v172_v52, 4 }
 0x14e   :  { %v176_v55 = vadd.f32 %v175_v53, %v172_v52 }
 0x150   :  { %v177_v57 = vrot.slane %v176_v55, 2 }
 0x152   :  { %v178_v59 = vadd.f32 %v177_v57, %v176_v55 }
 0x154   :  { %v179_v61 = vrot.slane %v178_v59, 1 }
 0x156   :  { %v180_v63 = vadd.f32 %v179_v61, %v178_v59 }
 0x158   :  { %v181_v1 = vmul.f32 0.125, %v180_v63 }
 0x15a   :  { %v182_v3 = vsub.f32 %v172_v52, %v181_v1 }
 0x15c   :  { %v183_v5 = vmul.f32 %v182_v3, %v182_v3 }
 0x15e   :  { %v184_v7 = vrot.slane %v183_v5, 4 }
 0x160   :  { %v185_v9 = vadd.f32 %v184_v7, %v183_v5 }
 0x162   :  { %v186_v11 = vrot.slane %v185_v9, 2 }
 0x164   :  { %v187_v13 = vadd.f32 %v186_v11, %v185_v9 }
 0x166   :  { %v188_v16 = vrot.slane %v187_v13, 1 }
 0x168   :  { %v189_v18 = vadd.f32 %v188_v16, %v187_v13 }
 0x16a   :  { %v190_v19 = vmul.f32 0.125, %v189_v18 }
 0x16c   :  { %v191_v20 = vadd.f32 1e-05, %v190_v19 }
 0x16e   :  { %260 = vrsqrt.f32 %v191_v20  ;;  %vm198_vm5 = vweird.f32 %v191_v20 }
 0x174   :  { %v261_v21 = vpop.eup %260 }
 0x175   :  { %v193_v22 = vmul.f32 %v261_v21, %v191_v20  ;;  %vm199_vm4 = vweird.f32 %v261_v21 }
 0x176   :  { %vm200_vm6 = vmor %vm198_vm5, %vm199_vm4 }
 0x177   :  { %v194_v23 = vmul.f32 %v261_v21, %v193_v22 }
 0x179   :  { %v195_v24 = vmul.f32 0.5, %v194_v23 }
 0x17b   :  { %v196_v25 = vsub.f32 1.5, %v195_v24 }
 0x17d   :  { %v197_v27 = vmul.f32 %v261_v21, %v196_v25 }
 0x17f   :  { %v201_v28 = vsel %vm200_vm6, %v261_v21, %v197_v27 }
 0x180   :  { %v202_v29 = vmul.f32 %v201_v28, %v95_v26 }
 0x182   :  { %v203_v30 = vperm.slane %v202_v29, 0 }
 0x184   :  { %v204_v32 = vmul.f32 %v203_v30, %v182_v3 }
 0x186   :  { %v206_v33 = vadd.f32 %v256_v31, %v204_v32 }
 0x188   :  { %v207_v34 = vmax.f32 %v206_v33, 0.0 }
 0x18a   :  { %225 = vmatmul.f32.vlgmr.msra.gmra.mxu2 %v207_v34 }
 0x20d   :  { %v226_v36 = vpop.f32.mrf.mxu2 }
 0x20e   :  { %v227_v37 = vadd.f32 %v257_v35, %v226_v36 }
 0x210   :  { %229 = vst [vmem:[#allocation8] sm:$0xff] %v227_v37 }
 0x211   :  { %240 = dma.vmem_to_hbm [thread:$0]  %s236_s2, 128, %s238_s30, [#allocation4]  }
 0x212   :  { %362 = dma.done.wait [#allocation4], 128  }
 0x213   :  { %363 = vsyncadd [#allocation4], 4294967168 }
 0x214   :  { %245 = vsyncpa [#allocation3], 1 }
 0x215   :  { %246 = vsyncpa [#allocation6], 1 }
 0x216   :  { %247 = vsyncpa [#allocation4], 1 }

</bundles_post_ra>
